<compile_context>
chip_gen: v5e
topology: v5e:2x2
jax: 0.10.0
libtpu: 0.0.40
codegen_flags: <defaults>
</compile_context>

<pallas_src>
import functools

import jax
import jax.numpy as jnp
from jax import lax
from jax.experimental import pallas as pl
from jax.experimental.pallas import tpu as pltpu

# Neighbor offsets (dy, dx) in the order of the 8 conv output channels built by
# LocalAffinity._init_aff (kernel tap (kh, kw) -> offset (kh - 1, kw - 1)).
NEIGHBOR_OFFSETS = (
    (-1, -1), (-1, 0), (-1, 1),
    (0, -1),           (0, 1),
    (1, -1), (1, 0), (1, 1),
)

N_GROUPS = 2                      # 8 channels split into 2 groups of 4
CHANS_PER_GROUP = 8 // N_GROUPS


def _shift_rows_clamped(x, shift):
    """y[..., h, :] = x[..., clamp(h + shift, 0, H-1), :]  (static shift)."""
    if shift == 0:
        return x
    h = x.shape[-2]
    if shift > 0:
        body = x[..., shift:h, :]
        edge = jnp.broadcast_to(x[..., h - 1:h, :],
                                x.shape[:-2] + (shift,) + x.shape[-1:])
        return jnp.concatenate([body, edge], axis=-2)
    s = -shift
    body = x[..., 0:h - s, :]
    edge = jnp.broadcast_to(x[..., 0:1, :],
                            x.shape[:-2] + (s,) + x.shape[-1:])
    return jnp.concatenate([edge, body], axis=-2)


def _shift_cols_clamped(x, shift):
    """y[..., w] = x[..., clamp(w + shift, 0, W-1)]  (static shift)."""
    if shift == 0:
        return x
    w = x.shape[-1]
    if shift > 0:
        body = x[..., shift:w]
        edge = jnp.broadcast_to(x[..., w - 1:w], x.shape[:-1] + (shift,))
        return jnp.concatenate([body, edge], axis=-1)
    s = -shift
    body = x[..., 0:w - s]
    edge = jnp.broadcast_to(x[..., 0:1], x.shape[:-1] + (s,))
    return jnp.concatenate([edge, body], axis=-1)


def _emit_plane_group(x_ref, o_ref, p, d, group):
    """Write 4 neighbor-difference channels for plane p, dilation d, group."""
    xp = x_ref[p]                                   # (H, W) center plane
    if group == 0:
        # channels 0..3: (-1,-1), (-1,0), (-1,+1), (0,-1)
        base = _shift_rows_clamped(xp, -d)          # rows for dy = -1
        chans = ((base, -d), (base, 0), (base, +d), (xp, -d))
    else:
        # channels 4..7: (0,+1), (+1,-1), (+1,0), (+1,+1)
        base = _shift_rows_clamped(xp, +d)          # rows for dy = +1
        chans = ((xp, +d), (base, -d), (base, 0), (base, +d))
    for c, (src, dx) in enumerate(chans):
        # One full-tile store per channel (no offset / partial stores).
        o_ref[p, c] = xp - _shift_cols_clamped(src, dx)


def _local_affinity_kernel(x_ref, o_ref, *, dilations, planes):
    # x_ref: (bkb, H, W) block of flattened B*K planes (block index is constant
    #        across the two inner grid axes, so it is DMA'd once per bk block).
    # o_ref: (bkb, 4, H, W) = one (dilation, channel-group) output block.
    nd = len(dilations)
    di_id = pl.program_id(1)
    g_id = pl.program_id(2)
    for di, d in enumerate(dilations):
        for g in range(N_GROUPS):
            if nd == 1:
                cond = g_id == g
            else:
                cond = jnp.logical_and(di_id == di, g_id == g)

            def _branch(d=d, g=g):
                # fori_loop over planes keeps only one (H, W) plane and one
                # row-shifted base live at a time (plane-sized vreg pressure).
                def body(p, carry):
                    _emit_plane_group(x_ref, o_ref, p, d, g)
                    return carry
                lax.fori_loop(0, planes, body, 0)

            pl.when(cond)(_branch)


def _largest_divisor_at_most(n, cap):
    cap = max(1, min(n, cap))
    for cand in range(cap, 0, -1):
        if n % cand == 0:
            return cand
    return 1


def local_affinity(x, dilations=(1,)):
    """Pallas equivalent of LocalAffinity(dilations).forward(x).

    x: (B, K, H, W) -> (B, K, 8 * len(dilations), H, W).
    """
    dilations = tuple(int(d) for d in dilations)
    B, K, H, W = x.shape
    nd = len(dilations)
    n_out = 8 * nd
    assert all(0 < d < min(H, W) for d in dilations)

    bk = B * K
    x3 = x.reshape(bk, H, W)               # free reshape; no pad / transpose

    itemsize = x.dtype.itemsize
    plane_bytes = H * W * itemsize

    # Generation-aware VMEM budget (v7x: 64 MiB, v5e/v6e: 128 MiB).
    try:
        vmem_cap = int(pltpu.get_tpu_info().vmem_capacity_bytes)
    except Exception:
        vmem_cap = 64 * 2**20
    budget = (3 * vmem_cap) // 4

    # Planes per step: big enough to amortize the ~0.35us/step pipeline
    # overhead (~2 MiB input-block target), small enough that the
    # double-buffered in+out blocks stay well inside the VMEM budget.
    per_plane_step = 2 * (1 + CHANS_PER_GROUP) * plane_bytes
    max_bkb_vmem = max(1, (budget - 16 * plane_bytes) // per_plane_step)
    target_bkb = max(1, (2 << 20) // plane_bytes)
    bkb = _largest_divisor_at_most(bk, min(target_bkb, max_bkb_vmem))
    # TODO(synk): planes so large that a single (1, 4, H, W) block plus
    # temporaries overflows the VMEM budget would need an extra H-strip grid
    # axis with a d-row halo; PAMR-scale planes never get there.

    blk_in = bkb * plane_bytes
    blk_out = bkb * CHANS_PER_GROUP * plane_bytes
    vmem_needed = 2 * (blk_in + blk_out) + 16 * plane_bytes
    vmem_limit = int(min(max(2 * vmem_needed, 32 << 20), budget))

    kernel = functools.partial(_local_affinity_kernel,
                               dilations=dilations, planes=bkb)

    out = pl.pallas_call(
        kernel,
        out_shape=jax.ShapeDtypeStruct((bk, n_out, H, W), x.dtype),
        grid_spec=pltpu.PrefetchScalarGridSpec(
            num_scalar_prefetch=0,
            grid=(bk // bkb, nd, N_GROUPS),
            in_specs=[pl.BlockSpec((bkb, H, W), lambda i, di, g: (i, 0, 0))],
            out_specs=pl.BlockSpec(
                (bkb, CHANS_PER_GROUP, H, W),
                lambda i, di, g: (i, di * N_GROUPS + g, 0, 0)),
        ),
        compiler_params=pltpu.CompilerParams(
            dimension_semantics=("parallel", "parallel", "parallel"),
            vmem_limit_bytes=vmem_limit),
    )(x3)

    return out.reshape(B, K, n_out, H, W)


def _local_affinity_reference(x, dilations=(1,)):
    """Pure-JAX reference: replicate padding == clamped neighbor indices."""
    B, K, H, W = x.shape
    hs = jnp.arange(H)
    ws = jnp.arange(W)
    outs = []
    for d in dilations:
        for (dy, dx) in NEIGHBOR_OFFSETS:
            hi = jnp.clip(hs + dy * d, 0, H - 1)
            wi = jnp.clip(ws + dx * d, 0, W - 1)
            nb = x[:, :, hi, :][:, :, :, wi]
            outs.append(x - nb)
    return jnp.stack(outs, axis=2)          # (B, K, 8*len(dilations), H, W)


if __name__ == "__main__":
    key = jax.random.PRNGKey(0)
    B, K, H, W = 2, 4, 16, 16
    dilations = (1, 2)   # module default is [1]; multi-dilation path exercised
    x = jax.random.normal(key, (B, K, H, W), dtype=jnp.float32)

    out = jax.block_until_ready(local_affinity(x, dilations))
    ref = _local_affinity_reference(x, dilations)

    assert out.shape == (B, K, 8 * len(dilations), H, W)
    assert jnp.allclose(out, ref, atol=1e-6, rtol=1e-6), float(
        jnp.max(jnp.abs(out - ref)))

    print("KERNEL_OK")
</pallas_src>

<mosaic_0001>
module attributes {stable_mosaic.version = 11 : i64} {
  func.func @_local_affinity_kernel(%arg0: i32, %arg1: i32, %arg2: i32, %arg3: memref<8x16x16xf32, #tpu.memory_space<vmem>>, %arg4: memref<8x4x16x16xf32, #tpu.memory_space<vmem>>) attributes {dimension_semantics = [#tpu.dimension_semantics<parallel>, #tpu.dimension_semantics<parallel>, #tpu.dimension_semantics<parallel>], iteration_bounds = array<i64: 1, 2, 2>, scalar_prefetch = 0 : i64, scratch_operands = 0 : i64, tpu.core_type = #tpu.core_type<tc>, window_params = [{transform_indices = @transform_0, window_bounds = array<i64: 8, 16, 16>}, {transform_indices = @transform_1, window_bounds = array<i64: 8, 4, 16, 16>}]} {
    %c0_i32 = arith.constant 0 : i32
    %0 = arith.cmpi eq, %arg1, %c0_i32 : i32
    %c0_i32_0 = arith.constant 0 : i32
    %1 = arith.cmpi eq, %arg2, %c0_i32_0 : i32
    %2 = arith.andi %0, %1 : i1
    %3 = arith.extui %2 : i1 to i32
    %c0_i32_1 = arith.constant 0 : i32
    %4 = arith.cmpi ne, %3, %c0_i32_1 : i32
    scf.if %4 {
      %c0_i32_10 = arith.constant 0 : i32
      %c8_i32 = arith.constant 8 : i32
      %20 = arith.addi %c0_i32_10, %c8_i32 : i32
      %c1_i32_11 = arith.constant 1 : i32
      scf.for %arg5 = %c0_i32_10 to %20 step %c1_i32_11  : i32 {
        %21 = arith.index_cast %arg5 : i32 to index
        %c0 = arith.constant 0 : index
        %c0_13 = arith.constant 0 : index
        %22 = vector.load %arg3[%21, %c0, %c0_13] : memref<8x16x16xf32, #tpu.memory_space<vmem>>, vector<1x16x16xf32>
        %23 = vector.shape_cast %22 : vector<1x16x16xf32> to vector<16x16xf32>
        %24 = vector.extract_strided_slice %23 {offsets = [0, 0], sizes = [15, 16], strides = [1, 1]} : vector<16x16xf32> to vector<15x16xf32>
        %25 = vector.extract_strided_slice %23 {offsets = [0, 0], sizes = [1, 16], strides = [1, 1]} : vector<16x16xf32> to vector<1x16xf32>
        %26 = tpu.concatenate %25, %24 in 0 : vector<1x16xf32>, vector<15x16xf32> -> vector<16x16xf32>
        %27 = vector.extract_strided_slice %26 {offsets = [0, 0], sizes = [16, 15], strides = [1, 1]} : vector<16x16xf32> to vector<16x15xf32>
        %28 = vector.extract_strided_slice %26 {offsets = [0, 0], sizes = [16, 1], strides = [1, 1]} : vector<16x16xf32> to vector<16x1xf32>
        %29 = tpu.concatenate %28, %27 in 1 : vector<16x1xf32>, vector<16x15xf32> -> vector<16x16xf32>
        %30 = arith.subf %23, %29 : vector<16x16xf32>
        %31 = arith.index_cast %arg5 : i32 to index
        %c0_14 = arith.constant 0 : index
        %c0_15 = arith.constant 0 : index
        %c0_16 = arith.constant 0 : index
        %32 = vector.load %arg4[%31, %c0_14, %c0_15, %c0_16] : memref<8x4x16x16xf32, #tpu.memory_space<vmem>>, vector<1x1x16x16xf32>
        %33 = vector.shape_cast %32 : vector<1x1x16x16xf32> to vector<16x16xf32>
        %34 = vector.shape_cast %30 : vector<16x16xf32> to vector<1x1x16x16xf32>
        tpu.vector_store %arg4[%31, %c0_14, %c0_15, %c0_16], %34 {strides = array<i32>} : memref<8x4x16x16xf32, #tpu.memory_space<vmem>>, vector<1x1x16x16xf32>,
        %35 = arith.subf %23, %26 : vector<16x16xf32>
        %36 = arith.index_cast %arg5 : i32 to index
        %c1 = arith.constant 1 : index
        %c0_17 = arith.constant 0 : index
        %c0_18 = arith.constant 0 : index
        %37 = vector.load %arg4[%36, %c1, %c0_17, %c0_18] : memref<8x4x16x16xf32, #tpu.memory_space<vmem>>, vector<1x1x16x16xf32>
        %38 = vector.shape_cast %37 : vector<1x1x16x16xf32> to vector<16x16xf32>
        %39 = vector.shape_cast %35 : vector<16x16xf32> to vector<1x1x16x16xf32>
        tpu.vector_store %arg4[%36, %c1, %c0_17, %c0_18], %39 {strides = array<i32>} : memref<8x4x16x16xf32, #tpu.memory_space<vmem>>, vector<1x1x16x16xf32>,
        %40 = vector.extract_strided_slice %26 {offsets = [0, 1], sizes = [16, 15], strides = [1, 1]} : vector<16x16xf32> to vector<16x15xf32>
        %41 = vector.extract_strided_slice %26 {offsets = [0, 15], sizes = [16, 1], strides = [1, 1]} : vector<16x16xf32> to vector<16x1xf32>
        %42 = tpu.concatenate %40, %41 in 1 : vector<16x15xf32>, vector<16x1xf32> -> vector<16x16xf32>
        %43 = arith.subf %23, %42 : vector<16x16xf32>
        %44 = arith.index_cast %arg5 : i32 to index
        %c2 = arith.constant 2 : index
        %c0_19 = arith.constant 0 : index
        %c0_20 = arith.constant 0 : index
        %45 = vector.load %arg4[%44, %c2, %c0_19, %c0_20] : memref<8x4x16x16xf32, #tpu.memory_space<vmem>>, vector<1x1x16x16xf32>
        %46 = vector.shape_cast %45 : vector<1x1x16x16xf32> to vector<16x16xf32>
        %47 = vector.shape_cast %43 : vector<16x16xf32> to vector<1x1x16x16xf32>
        tpu.vector_store %arg4[%44, %c2, %c0_19, %c0_20], %47 {strides = array<i32>} : memref<8x4x16x16xf32, #tpu.memory_space<vmem>>, vector<1x1x16x16xf32>,
        %48 = vector.extract_strided_slice %23 {offsets = [0, 0], sizes = [16, 15], strides = [1, 1]} : vector<16x16xf32> to vector<16x15xf32>
        %49 = vector.extract_strided_slice %23 {offsets = [0, 0], sizes = [16, 1], strides = [1, 1]} : vector<16x16xf32> to vector<16x1xf32>
        %50 = tpu.concatenate %49, %48 in 1 : vector<16x1xf32>, vector<16x15xf32> -> vector<16x16xf32>
        %51 = arith.subf %23, %50 : vector<16x16xf32>
        %52 = arith.index_cast %arg5 : i32 to index
        %c3 = arith.constant 3 : index
        %c0_21 = arith.constant 0 : index
        %c0_22 = arith.constant 0 : index
        %53 = vector.load %arg4[%52, %c3, %c0_21, %c0_22] : memref<8x4x16x16xf32, #tpu.memory_space<vmem>>, vector<1x1x16x16xf32>
        %54 = vector.shape_cast %53 : vector<1x1x16x16xf32> to vector<16x16xf32>
        %55 = vector.shape_cast %51 : vector<16x16xf32> to vector<1x1x16x16xf32>
        tpu.vector_store %arg4[%52, %c3, %c0_21, %c0_22], %55 {strides = array<i32>} : memref<8x4x16x16xf32, #tpu.memory_space<vmem>>, vector<1x1x16x16xf32>,
      }
      %c8_i32_12 = arith.constant 8 : i32
    } else {
    }
    %c0_i32_2 = arith.constant 0 : i32
    %5 = arith.cmpi eq, %arg1, %c0_i32_2 : i32
    %c1_i32 = arith.constant 1 : i32
    %6 = arith.cmpi eq, %arg2, %c1_i32 : i32
    %7 = arith.andi %5, %6 : i1
    %8 = arith.extui %7 : i1 to i32
    %c0_i32_3 = arith.constant 0 : i32
    %9 = arith.cmpi ne, %8, %c0_i32_3 : i32
    scf.if %9 {
      %c0_i32_10 = arith.constant 0 : i32
      %c8_i32 = arith.constant 8 : i32
      %20 = arith.addi %c0_i32_10, %c8_i32 : i32
      %c1_i32_11 = arith.constant 1 : i32
      scf.for %arg5 = %c0_i32_10 to %20 step %c1_i32_11  : i32 {
        %21 = arith.index_cast %arg5 : i32 to index
        %c0 = arith.constant 0 : index
        %c0_13 = arith.constant 0 : index
        %22 = vector.load %arg3[%21, %c0, %c0_13] : memref<8x16x16xf32, #tpu.memory_space<vmem>>, vector<1x16x16xf32>
        %23 = vector.shape_cast %22 : vector<1x16x16xf32> to vector<16x16xf32>
        %24 = vector.extract_strided_slice %23 {offsets = [1, 0], sizes = [15, 16], strides = [1, 1]} : vector<16x16xf32> to vector<15x16xf32>
        %25 = vector.extract_strided_slice %23 {offsets = [15, 0], sizes = [1, 16], strides = [1, 1]} : vector<16x16xf32> to vector<1x16xf32>
        %26 = tpu.concatenate %24, %25 in 0 : vector<15x16xf32>, vector<1x16xf32> -> vector<16x16xf32>
        %27 = vector.extract_strided_slice %23 {offsets = [0, 1], sizes = [16, 15], strides = [1, 1]} : vector<16x16xf32> to vector<16x15xf32>
        %28 = vector.extract_strided_slice %23 {offsets = [0, 15], sizes = [16, 1], strides = [1, 1]} : vector<16x16xf32> to vector<16x1xf32>
        %29 = tpu.concatenate %27, %28 in 1 : vector<16x15xf32>, vector<16x1xf32> -> vector<16x16xf32>
        %30 = arith.subf %23, %29 : vector<16x16xf32>
        %31 = arith.index_cast %arg5 : i32 to index
        %c0_14 = arith.constant 0 : index
        %c0_15 = arith.constant 0 : index
        %c0_16 = arith.constant 0 : index
        %32 = vector.load %arg4[%31, %c0_14, %c0_15, %c0_16] : memref<8x4x16x16xf32, #tpu.memory_space<vmem>>, vector<1x1x16x16xf32>
        %33 = vector.shape_cast %32 : vector<1x1x16x16xf32> to vector<16x16xf32>
        %34 = vector.shape_cast %30 : vector<16x16xf32> to vector<1x1x16x16xf32>
        tpu.vector_store %arg4[%31, %c0_14, %c0_15, %c0_16], %34 {strides = array<i32>} : memref<8x4x16x16xf32, #tpu.memory_space<vmem>>, vector<1x1x16x16xf32>,
        %35 = vector.extract_strided_slice %26 {offsets = [0, 0], sizes = [16, 15], strides = [1, 1]} : vector<16x16xf32> to vector<16x15xf32>
        %36 = vector.extract_strided_slice %26 {offsets = [0, 0], sizes = [16, 1], strides = [1, 1]} : vector<16x16xf32> to vector<16x1xf32>
        %37 = tpu.concatenate %36, %35 in 1 : vector<16x1xf32>, vector<16x15xf32> -> vector<16x16xf32>
        %38 = arith.subf %23, %37 : vector<16x16xf32>
        %39 = arith.index_cast %arg5 : i32 to index
        %c1 = arith.constant 1 : index
        %c0_17 = arith.constant 0 : index
        %c0_18 = arith.constant 0 : index
        %40 = vector.load %arg4[%39, %c1, %c0_17, %c0_18] : memref<8x4x16x16xf32, #tpu.memory_space<vmem>>, vector<1x1x16x16xf32>
        %41 = vector.shape_cast %40 : vector<1x1x16x16xf32> to vector<16x16xf32>
        %42 = vector.shape_cast %38 : vector<16x16xf32> to vector<1x1x16x16xf32>
        tpu.vector_store %arg4[%39, %c1, %c0_17, %c0_18], %42 {strides = array<i32>} : memref<8x4x16x16xf32, #tpu.memory_space<vmem>>, vector<1x1x16x16xf32>,
        %43 = arith.subf %23, %26 : vector<16x16xf32>
        %44 = arith.index_cast %arg5 : i32 to index
        %c2 = arith.constant 2 : index
        %c0_19 = arith.constant 0 : index
        %c0_20 = arith.constant 0 : index
        %45 = vector.load %arg4[%44, %c2, %c0_19, %c0_20] : memref<8x4x16x16xf32, #tpu.memory_space<vmem>>, vector<1x1x16x16xf32>
        %46 = vector.shape_cast %45 : vector<1x1x16x16xf32> to vector<16x16xf32>
        %47 = vector.shape_cast %43 : vector<16x16xf32> to vector<1x1x16x16xf32>
        tpu.vector_store %arg4[%44, %c2, %c0_19, %c0_20], %47 {strides = array<i32>} : memref<8x4x16x16xf32, #tpu.memory_space<vmem>>, vector<1x1x16x16xf32>,
        %48 = vector.extract_strided_slice %26 {offsets = [0, 1], sizes = [16, 15], strides = [1, 1]} : vector<16x16xf32> to vector<16x15xf32>
        %49 = vector.extract_strided_slice %26 {offsets = [0, 15], sizes = [16, 1], strides = [1, 1]} : vector<16x16xf32> to vector<16x1xf32>
        %50 = tpu.concatenate %48, %49 in 1 : vector<16x15xf32>, vector<16x1xf32> -> vector<16x16xf32>
        %51 = arith.subf %23, %50 : vector<16x16xf32>
        %52 = arith.index_cast %arg5 : i32 to index
        %c3 = arith.constant 3 : index
        %c0_21 = arith.constant 0 : index
        %c0_22 = arith.constant 0 : index
        %53 = vector.load %arg4[%52, %c3, %c0_21, %c0_22] : memref<8x4x16x16xf32, #tpu.memory_space<vmem>>, vector<1x1x16x16xf32>
        %54 = vector.shape_cast %53 : vector<1x1x16x16xf32> to vector<16x16xf32>
        %55 = vector.shape_cast %51 : vector<16x16xf32> to vector<1x1x16x16xf32>
        tpu.vector_store %arg4[%52, %c3, %c0_21, %c0_22], %55 {strides = array<i32>} : memref<8x4x16x16xf32, #tpu.memory_space<vmem>>, vector<1x1x16x16xf32>,
      }
      %c8_i32_12 = arith.constant 8 : i32
    } else {
    }
    %c1_i32_4 = arith.constant 1 : i32
    %10 = arith.cmpi eq, %arg1, %c1_i32_4 : i32
    %c0_i32_5 = arith.constant 0 : i32
    %11 = arith.cmpi eq, %arg2, %c0_i32_5 : i32
    %12 = arith.andi %10, %11 : i1
    %13 = arith.extui %12 : i1 to i32
    %c0_i32_6 = arith.constant 0 : i32
    %14 = arith.cmpi ne, %13, %c0_i32_6 : i32
    scf.if %14 {
      %c0_i32_10 = arith.constant 0 : i32
      %c8_i32 = arith.constant 8 : i32
      %20 = arith.addi %c0_i32_10, %c8_i32 : i32
      %c1_i32_11 = arith.constant 1 : i32
      scf.for %arg5 = %c0_i32_10 to %20 step %c1_i32_11  : i32 {
        %21 = arith.index_cast %arg5 : i32 to index
        %c0 = arith.constant 0 : index
        %c0_13 = arith.constant 0 : index
        %22 = vector.load %arg3[%21, %c0, %c0_13] : memref<8x16x16xf32, #tpu.memory_space<vmem>>, vector<1x16x16xf32>
        %23 = vector.shape_cast %22 : vector<1x16x16xf32> to vector<16x16xf32>
        %24 = vector.extract_strided_slice %23 {offsets = [0, 0], sizes = [14, 16], strides = [1, 1]} : vector<16x16xf32> to vector<14x16xf32>
        %25 = vector.extract_strided_slice %23 {offsets = [0, 0], sizes = [1, 16], strides = [1, 1]} : vector<16x16xf32> to vector<1x16xf32>
        %26 = vector.shape_cast %25 : vector<1x16xf32> to vector<1x16xf32>
        %27 = vector.broadcast %26 : vector<1x16xf32> to vector<2x16xf32>
        %28 = tpu.concatenate %27, %24 in 0 : vector<2x16xf32>, vector<14x16xf32> -> vector<16x16xf32>
        %29 = vector.extract_strided_slice %28 {offsets = [0, 0], sizes = [16, 14], strides = [1, 1]} : vector<16x16xf32> to vector<16x14xf32>
        %30 = vector.extract_strided_slice %28 {offsets = [0, 0], sizes = [16, 1], strides = [1, 1]} : vector<16x16xf32> to vector<16x1xf32>
        %31 = vector.shape_cast %30 : vector<16x1xf32> to vector<16x1xf32>
        %32 = vector.broadcast %31 : vector<16x1xf32> to vector<16x2xf32>
        %33 = tpu.concatenate %32, %29 in 1 : vector<16x2xf32>, vector<16x14xf32> -> vector<16x16xf32>
        %34 = arith.subf %23, %33 : vector<16x16xf32>
        %35 = arith.index_cast %arg5 : i32 to index
        %c0_14 = arith.constant 0 : index
        %c0_15 = arith.constant 0 : index
        %c0_16 = arith.constant 0 : index
        %36 = vector.load %arg4[%35, %c0_14, %c0_15, %c0_16] : memref<8x4x16x16xf32, #tpu.memory_space<vmem>>, vector<1x1x16x16xf32>
        %37 = vector.shape_cast %36 : vector<1x1x16x16xf32> to vector<16x16xf32>
        %38 = vector.shape_cast %34 : vector<16x16xf32> to vector<1x1x16x16xf32>
        tpu.vector_store %arg4[%35, %c0_14, %c0_15, %c0_16], %38 {strides = array<i32>} : memref<8x4x16x16xf32, #tpu.memory_space<vmem>>, vector<1x1x16x16xf32>,
        %39 = arith.subf %23, %28 : vector<16x16xf32>
        %40 = arith.index_cast %arg5 : i32 to index
        %c1 = arith.constant 1 : index
        %c0_17 = arith.constant 0 : index
        %c0_18 = arith.constant 0 : index
        %41 = vector.load %arg4[%40, %c1, %c0_17, %c0_18] : memref<8x4x16x16xf32, #tpu.memory_space<vmem>>, vector<1x1x16x16xf32>
        %42 = vector.shape_cast %41 : vector<1x1x16x16xf32> to vector<16x16xf32>
        %43 = vector.shape_cast %39 : vector<16x16xf32> to vector<1x1x16x16xf32>
        tpu.vector_store %arg4[%40, %c1, %c0_17, %c0_18], %43 {strides = array<i32>} : memref<8x4x16x16xf32, #tpu.memory_space<vmem>>, vector<1x1x16x16xf32>,
        %44 = vector.extract_strided_slice %28 {offsets = [0, 2], sizes = [16, 14], strides = [1, 1]} : vector<16x16xf32> to vector<16x14xf32>
        %45 = vector.extract_strided_slice %28 {offsets = [0, 15], sizes = [16, 1], strides = [1, 1]} : vector<16x16xf32> to vector<16x1xf32>
        %46 = vector.shape_cast %45 : vector<16x1xf32> to vector<16x1xf32>
        %47 = vector.broadcast %46 : vector<16x1xf32> to vector<16x2xf32>
        %48 = tpu.concatenate %44, %47 in 1 : vector<16x14xf32>, vector<16x2xf32> -> vector<16x16xf32>
        %49 = arith.subf %23, %48 : vector<16x16xf32>
        %50 = arith.index_cast %arg5 : i32 to index
        %c2 = arith.constant 2 : index
        %c0_19 = arith.constant 0 : index
        %c0_20 = arith.constant 0 : index
        %51 = vector.load %arg4[%50, %c2, %c0_19, %c0_20] : memref<8x4x16x16xf32, #tpu.memory_space<vmem>>, vector<1x1x16x16xf32>
        %52 = vector.shape_cast %51 : vector<1x1x16x16xf32> to vector<16x16xf32>
        %53 = vector.shape_cast %49 : vector<16x16xf32> to vector<1x1x16x16xf32>
        tpu.vector_store %arg4[%50, %c2, %c0_19, %c0_20], %53 {strides = array<i32>} : memref<8x4x16x16xf32, #tpu.memory_space<vmem>>, vector<1x1x16x16xf32>,
        %54 = vector.extract_strided_slice %23 {offsets = [0, 0], sizes = [16, 14], strides = [1, 1]} : vector<16x16xf32> to vector<16x14xf32>
        %55 = vector.extract_strided_slice %23 {offsets = [0, 0], sizes = [16, 1], strides = [1, 1]} : vector<16x16xf32> to vector<16x1xf32>
        %56 = vector.shape_cast %55 : vector<16x1xf32> to vector<16x1xf32>
        %57 = vector.broadcast %56 : vector<16x1xf32> to vector<16x2xf32>
        %58 = tpu.concatenate %57, %54 in 1 : vector<16x2xf32>, vector<16x14xf32> -> vector<16x16xf32>
        %59 = arith.subf %23, %58 : vector<16x16xf32>
        %60 = arith.index_cast %arg5 : i32 to index
        %c3 = arith.constant 3 : index
        %c0_21 = arith.constant 0 : index
        %c0_22 = arith.constant 0 : index
        %61 = vector.load %arg4[%60, %c3, %c0_21, %c0_22] : memref<8x4x16x16xf32, #tpu.memory_space<vmem>>, vector<1x1x16x16xf32>
        %62 = vector.shape_cast %61 : vector<1x1x16x16xf32> to vector<16x16xf32>
        %63 = vector.shape_cast %59 : vector<16x16xf32> to vector<1x1x16x16xf32>
        tpu.vector_store %arg4[%60, %c3, %c0_21, %c0_22], %63 {strides = array<i32>} : memref<8x4x16x16xf32, #tpu.memory_space<vmem>>, vector<1x1x16x16xf32>,
      }
      %c8_i32_12 = arith.constant 8 : i32
    } else {
    }
    %c1_i32_7 = arith.constant 1 : i32
    %15 = arith.cmpi eq, %arg1, %c1_i32_7 : i32
    %c1_i32_8 = arith.constant 1 : i32
    %16 = arith.cmpi eq, %arg2, %c1_i32_8 : i32
    %17 = arith.andi %15, %16 : i1
    %18 = arith.extui %17 : i1 to i32
    %c0_i32_9 = arith.constant 0 : i32
    %19 = arith.cmpi ne, %18, %c0_i32_9 : i32
    scf.if %19 {
      %c0_i32_10 = arith.constant 0 : i32
      %c8_i32 = arith.constant 8 : i32
      %20 = arith.addi %c0_i32_10, %c8_i32 : i32
      %c1_i32_11 = arith.constant 1 : i32
      scf.for %arg5 = %c0_i32_10 to %20 step %c1_i32_11  : i32 {
        %21 = arith.index_cast %arg5 : i32 to index
        %c0 = arith.constant 0 : index
        %c0_13 = arith.constant 0 : index
        %22 = vector.load %arg3[%21, %c0, %c0_13] : memref<8x16x16xf32, #tpu.memory_space<vmem>>, vector<1x16x16xf32>
        %23 = vector.shape_cast %22 : vector<1x16x16xf32> to vector<16x16xf32>
        %24 = vector.extract_strided_slice %23 {offsets = [2, 0], sizes = [14, 16], strides = [1, 1]} : vector<16x16xf32> to vector<14x16xf32>
        %25 = vector.extract_strided_slice %23 {offsets = [15, 0], sizes = [1, 16], strides = [1, 1]} : vector<16x16xf32> to vector<1x16xf32>
        %26 = vector.shape_cast %25 : vector<1x16xf32> to vector<1x16xf32>
        %27 = vector.broadcast %26 : vector<1x16xf32> to vector<2x16xf32>
        %28 = tpu.concatenate %24, %27 in 0 : vector<14x16xf32>, vector<2x16xf32> -> vector<16x16xf32>
        %29 = vector.extract_strided_slice %23 {offsets = [0, 2], sizes = [16, 14], strides = [1, 1]} : vector<16x16xf32> to vector<16x14xf32>
        %30 = vector.extract_strided_slice %23 {offsets = [0, 15], sizes = [16, 1], strides = [1, 1]} : vector<16x16xf32> to vector<16x1xf32>
        %31 = vector.shape_cast %30 : vector<16x1xf32> to vector<16x1xf32>
        %32 = vector.broadcast %31 : vector<16x1xf32> to vector<16x2xf32>
        %33 = tpu.concatenate %29, %32 in 1 : vector<16x14xf32>, vector<16x2xf32> -> vector<16x16xf32>
        %34 = arith.subf %23, %33 : vector<16x16xf32>
        %35 = arith.index_cast %arg5 : i32 to index
        %c0_14 = arith.constant 0 : index
        %c0_15 = arith.constant 0 : index
        %c0_16 = arith.constant 0 : index
        %36 = vector.load %arg4[%35, %c0_14, %c0_15, %c0_16] : memref<8x4x16x16xf32, #tpu.memory_space<vmem>>, vector<1x1x16x16xf32>
        %37 = vector.shape_cast %36 : vector<1x1x16x16xf32> to vector<16x16xf32>
        %38 = vector.shape_cast %34 : vector<16x16xf32> to vector<1x1x16x16xf32>
        tpu.vector_store %arg4[%35, %c0_14, %c0_15, %c0_16], %38 {strides = array<i32>} : memref<8x4x16x16xf32, #tpu.memory_space<vmem>>, vector<1x1x16x16xf32>,
        %39 = vector.extract_strided_slice %28 {offsets = [0, 0], sizes = [16, 14], strides = [1, 1]} : vector<16x16xf32> to vector<16x14xf32>
        %40 = vector.extract_strided_slice %28 {offsets = [0, 0], sizes = [16, 1], strides = [1, 1]} : vector<16x16xf32> to vector<16x1xf32>
        %41 = vector.shape_cast %40 : vector<16x1xf32> to vector<16x1xf32>
        %42 = vector.broadcast %41 : vector<16x1xf32> to vector<16x2xf32>
        %43 = tpu.concatenate %42, %39 in 1 : vector<16x2xf32>, vector<16x14xf32> -> vector<16x16xf32>
        %44 = arith.subf %23, %43 : vector<16x16xf32>
        %45 = arith.index_cast %arg5 : i32 to index
        %c1 = arith.constant 1 : index
        %c0_17 = arith.constant 0 : index
        %c0_18 = arith.constant 0 : index
        %46 = vector.load %arg4[%45, %c1, %c0_17, %c0_18] : memref<8x4x16x16xf32, #tpu.memory_space<vmem>>, vector<1x1x16x16xf32>
        %47 = vector.shape_cast %46 : vector<1x1x16x16xf32> to vector<16x16xf32>
        %48 = vector.shape_cast %44 : vector<16x16xf32> to vector<1x1x16x16xf32>
        tpu.vector_store %arg4[%45, %c1, %c0_17, %c0_18], %48 {strides = array<i32>} : memref<8x4x16x16xf32, #tpu.memory_space<vmem>>, vector<1x1x16x16xf32>,
        %49 = arith.subf %23, %28 : vector<16x16xf32>
        %50 = arith.index_cast %arg5 : i32 to index
        %c2 = arith.constant 2 : index
        %c0_19 = arith.constant 0 : index
        %c0_20 = arith.constant 0 : index
        %51 = vector.load %arg4[%50, %c2, %c0_19, %c0_20] : memref<8x4x16x16xf32, #tpu.memory_space<vmem>>, vector<1x1x16x16xf32>
        %52 = vector.shape_cast %51 : vector<1x1x16x16xf32> to vector<16x16xf32>
        %53 = vector.shape_cast %49 : vector<16x16xf32> to vector<1x1x16x16xf32>
        tpu.vector_store %arg4[%50, %c2, %c0_19, %c0_20], %53 {strides = array<i32>} : memref<8x4x16x16xf32, #tpu.memory_space<vmem>>, vector<1x1x16x16xf32>,
        %54 = vector.extract_strided_slice %28 {offsets = [0, 2], sizes = [16, 14], strides = [1, 1]} : vector<16x16xf32> to vector<16x14xf32>
        %55 = vector.extract_strided_slice %28 {offsets = [0, 15], sizes = [16, 1], strides = [1, 1]} : vector<16x16xf32> to vector<16x1xf32>
        %56 = vector.shape_cast %55 : vector<16x1xf32> to vector<16x1xf32>
        %57 = vector.broadcast %56 : vector<16x1xf32> to vector<16x2xf32>
        %58 = tpu.concatenate %54, %57 in 1 : vector<16x14xf32>, vector<16x2xf32> -> vector<16x16xf32>
        %59 = arith.subf %23, %58 : vector<16x16xf32>
        %60 = arith.index_cast %arg5 : i32 to index
        %c3 = arith.constant 3 : index
        %c0_21 = arith.constant 0 : index
        %c0_22 = arith.constant 0 : index
        %61 = vector.load %arg4[%60, %c3, %c0_21, %c0_22] : memref<8x4x16x16xf32, #tpu.memory_space<vmem>>, vector<1x1x16x16xf32>
        %62 = vector.shape_cast %61 : vector<1x1x16x16xf32> to vector<16x16xf32>
        %63 = vector.shape_cast %59 : vector<16x16xf32> to vector<1x1x16x16xf32>
        tpu.vector_store %arg4[%60, %c3, %c0_21, %c0_22], %63 {strides = array<i32>} : memref<8x4x16x16xf32, #tpu.memory_space<vmem>>, vector<1x1x16x16xf32>,
      }
      %c8_i32_12 = arith.constant 8 : i32
    } else {
    }
    return
  }
  func.func @transform_0(%arg0: i32, %arg1: i32, %arg2: i32) -> (i32, i32, i32) {
    %c0_i32 = arith.constant 0 : i32
    %c0_i32_0 = arith.constant 0 : i32
    %c0_i32_1 = arith.constant 0 : i32
    return %arg0, %c0_i32, %c0_i32_0 : i32, i32, i32
  }
  func.func @transform_1(%arg0: i32, %arg1: i32, %arg2: i32) -> (i32, i32, i32, i32) {
    %c2_i32 = arith.constant 2 : i32
    %0 = arith.muli %arg1, %c2_i32 : i32
    %1 = arith.addi %0, %arg2 : i32
    %c0_i32 = arith.constant 0 : i32
    %c0_i32_0 = arith.constant 0 : i32
    %c0_i32_1 = arith.constant 0 : i32
    return %arg0, %1, %c0_i32, %c0_i32_0 : i32, i32, i32, i32
  }
}

</mosaic_0001>

<bundles_post_ra>
// kernel: tpu_custom_call.1
= control target key start
LH: loop header
LB: loop body
LE: loop exit
PB: predicated region body
PF: predicated region fallthrough
CT: control target
= control target key end

     0   :  { %6 = vsyncpa [#allocation3], 0  ;;  %s1377_s0 = inlined_call_operand.hbm [shape: f32[8,16,16], index: 0, kind: input, shape index: {}]   ;;  %s1378_s1 = inlined_call_operand.hbm [shape: f32[8,16,16,16], index: 1, kind: output, shape index: {}]  }
   0x1   :  { %7 = vsyncpa [#allocation4], 0 }
   0x2   :  { %9 = vsyncpa [#allocation4 + $0x1], 0  ;;  %s1078_s6 = smov 0   ;;  %s1080_s7 = smov 0  }
   0x3   :  { %s1082_s8 = smov 0   ;;  %s1084_s9 = smov 0  }
   0x4   :  { %s1086_s10 = smov 0   ;;  %s1088_s11 = smov 0  }
   0x5   :  { %s1090_s12 = smov 0   ;;  %s1092_s13 = smov 0  }
   0x6 LB: > { %s705_s14 = sadd.s32 4294967295, %s1029_s13   ;;  %s706_s15 = sadd.s32 4294967294, %s1029_s13   ;;  %s1029_s13 = sphi %s1092_s13, %s15_s13   ;;  %s1025_s12 = sphi %s1090_s12, %s1389_s12   ;;  %s1021_s11 = sphi %s1088_s11, %s1388_s11   ;;  %s1017_s10 = sphi %s1086_s10, %s1387_s10   ;;  %s1013_s9 = sphi %s1084_s9, %s1386_s9   ;;  %s1009_s8 = sphi %s1082_s8, %s1385_s8   ;;  %s1005_s7 = sphi %s1080_s7, %s1384_s7   ;;  %s1001_s6 = sphi %s1078_s6, %s1383_s6  }
   0x7   : > { %s27_s16 = sadd.s32 1, %s1021_s11  ;;  %s30_s17 = sadd.s32 1, %s1025_s12 }
   0x8   : > { %p28_p0 = scmp.ge.s32.totalorder %s27_s16, 2  ;;  %s707_s18 = sshll.u32 %s1025_s12, 1 }
   0x9   : > { %s65_s19 = sadd.s32 %s1021_s11, %s707_s18  ;;  %s73_s20 = sadd.s32 1, %s1009_s8 }
   0xa   : > { %s1391_s16 = smov (%p28_p0, %s27_s16), 0  ;;  %s1393_s17 = smov (!%p28_p0, %s30_s17), %s1025_s12 }
   0xb   : > { %p83_p1 = scmp.ne.s32.totalorder %s1009_s8, %s1005_s7  ;;  %p84_p2 = scmp.eq.s32.totalorder %s705_s14, 3 }
   0xc   : > { %p32_p3 = scmp.ge.s32.totalorder %s1393_s17, 2  ;;  %p89_p4 = scmp.ne.s32.totalorder %s1005_s7, %s1001_s6 }
   0xd   : > { %p1132_p5 = por %p84_p2, %p83_p1  ;;  %p90_p6 = scmp.eq.s32.totalorder %s706_s15, 3 }
   0xe   : > { %s1395_s17 = smov (%p32_p3, %s1393_s17), 0  ;;  %p709_p8 = scmp.ge.s32.totalorder %s1029_s13, 1 }
   0xf   : > { %p1138_p7 = por %p90_p6, %p89_p4  ;;  %s708_s23 = sshll.u32 %s1395_s17, 1 }
  0x10   : > { %p97_p9 = scmp.lt.s32.totalorder %s1029_s13, 5  ;;  %s67_s24 = sadd.s32 %s708_s23, %s1391_s16 }
  0x11   : > { %s69_s25 = ssub.s32 %s65_s19, %s67_s24  ;;  %p1150_p12 = scmp.eq.s32.totalorder %s705_s14, 0 }
  0x12   : > { %p1146_p10 = pnand %p709_p8, %p97_p9  ;;  %p71_p11 = scmp.eq.s32.totalorder %s69_s25, 0 }
  0x13   : > { %s112_s30 = sshll.u32 %s1377_s0, 4  ;;  %s1047_s3 = smov [#allocation2]   ;;  %s113_s30 = int_to_ptr.hbm [resolvable:$true] %s112_s30 }
  0x14   : > { %p779_p13 = pneg %p1146_p10  ;;  %s114_s4 = sshll.u32 %s1047_s3, 4  ;;  %s115_s4 = int_to_ptr.vmem [resolvable:$true] %s114_s4 }
  0x15   : > { %s1160_s2 = scalar_select %p71_p11, %s1009_s8, %s73_s20  }
  0x16   : > { %p780_p0 = pnand %p1150_p12, %p779_p13  ;;  %s1048_s5 = smov 128  }
  0x17   : > { %s1049_s14 = smov 8   ;;  %130 = sbr.rel (%p1146_p10) target bundleno = 640 (0x280), region = 24 }
  0x18   : > { %782 = dma.hbm_to_vmem [thread:$0]  (!%p780_p0), %s113_s30, 2048, %s115_s4, [#allocation3], %s1048_s5, %s1048_s5, %s1049_s14  }
  0x1c   : > { %992 = dma.done.wait (%p1150_p12), [#allocation3], 2048  }
  0x1d   : > { %994 = vsyncadd (%p1150_p12), [#allocation3], 4294965248  ;;  %s143_s15 = sand.u32 1, %s1005_s7   ;;  %p151_p1 = scmp.eq.s32.totalorder %s1017_s10, 0 }
  0x1e   : > { %s713_s18 = sshll.u32 %s143_s15, 9  ;;  %p152_p2 = scmp.eq.s32.totalorder %s1013_s9, 0 }
  0x1f   : > { %s1179_s19 = scalar_lea.vmem [#allocation5], %s713_s18 }
  0x20   : > { %p153_p3 = pnand %p152_p2, %p151_p1 }
  0x21   : > { %s1181_s20 = smov (!%p153_p3), 0  }
  0x22   : > { %156 = sbr.rel (%p153_p3) target bundleno = 173 (0xad), region = 32 }
  0x27 LB: >> { %s714_s23 = sshll.u32 %s1033_s20, 4  ;;  %vm169_vm0 = vcmask 1040384   ;;  %s1050_s25 = smov 1   ;;  %vm190_vm1 = vcmask 130048   ;;  %vm183_vm2 = vcmask 7168   ;;  %vm205_vm3 = vcmask 121856   ;;  %s1033_s20 = sphi %s1181_s20, %s162_s20  }
  0x28   : >> { %s164_s24 = scalar_lea.vmem [#allocation2], %s714_s23  ;;  %s715_s26 = sshll.u32 %s1033_s20, 6 }
  0x29   : >> { %v165_v0 = vld [vmem:[%s164_s24] sm:$0xff]  ;;  %v166_v1 = vld [vmem:[%s164_s24 + $0x8] sm:$0xff]  ;;  %s1051_s27 = smov 127   ;;  %s1189_s28 = scalar_lea.vmem %s1179_s19, %s715_s26 [#allocation5] }
  0x2a   : >> { %v170_v2 = vrot.slane %v165_v0, 7  ;;  %v171_v3 = vrot.slane %v166_v1, 7  ;;  %214 = vrot.lane.b32.xlu2 %v165_v0, %s1050_s25  ;;  %s162_s20 = sadd.s32 1, %s1033_s20  }
  0x2b   : >> { %p159_p4 = scmp.ge.s32.totalorder %s162_s20, 8  }
  0x2c   : >> { %v175_v4 = vsel %vm169_vm0, %v165_v0, %v170_v2  ;;  %v172_v5 = vsel %vm169_vm0, %v170_v2, %v171_v3 }
  0x2d   : >> { %199 = vrot.lane.b32.xlu1 %v175_v4, %s1051_s27  ;;  %v193_v6 = vsub.f32 %v165_v0, %v175_v4  ;;  %177 = vrot.lane.b32.xlu0 %v175_v4, %s1050_s25  ;;  %v194_v7 = vsub.f32 %v166_v1, %v172_v5 }
  0x2f   : >> { %717 = vst.msk [vmem:[%s1189_s28 + $0x10] sm:$0xff] %vm190_vm1, %v193_v6 }
  0x30   : >> { %718 = vst.msk [vmem:[%s1189_s28 + $0x18] sm:$0xff] %vm190_vm1, %v194_v7 }
  0x32   : >> { %216 = vrot.lane.b32.xlu2 %v166_v1, %s1050_s25 }
  0x35   : >> { %201 = vrot.lane.b32.xlu1 %v172_v5, %s1051_s27  ;;  %179 = vrot.lane.b32.xlu0 %v172_v5, %s1050_s25 }
  0x84   : >> { %v215_v8 = vpop.permute.xlu2 %214 }
  0x85   : >> { %v220_v9 = vsel %vm183_vm2, %v165_v0, %v215_v8 }
  0x86   : >> { %v222_v10 = vsub.f32 %v165_v0, %v220_v9 }
  0x88   : >> { %723 = vst.msk [vmem:[%s1189_s28 + $0x30] sm:$0xff] %vm190_vm1, %v222_v10 }
  0x8c   : >> { %v217_v11 = vpop.permute.xlu2 %216 }
  0x8d   : >> { %v221_v12 = vsel %vm183_vm2, %v166_v1, %v217_v11 }
  0x8e   : >> { %v223_v13 = vsub.f32 %v166_v1, %v221_v12 }
  0x90   : >> { %724 = vst.msk [vmem:[%s1189_s28 + $0x38] sm:$0xff] %vm190_vm1, %v223_v13 }
  0x9f   : >> { %v200_v14 = vpop.permute.xlu1 %199  ;;  %v178_v15 = vpop.permute.xlu0 %177 }
  0xa0   : >> { %v206_v16 = vsel %vm205_vm3, %v200_v14, %v175_v4  ;;  %v184_v17 = vsel %vm183_vm2, %v175_v4, %v178_v15 }
  0xa1   : >> { %v208_v18 = vsub.f32 %v165_v0, %v206_v16  ;;  %v186_v19 = vsub.f32 %v165_v0, %v184_v17 }
  0xa3   : >> { %720 = vst.msk [vmem:[%s1189_s28 + $0x20] sm:$0xff] %vm190_vm1, %v208_v18 }
  0xa4   : >> { %191 = vst.msk [vmem:[%s1189_s28] sm:$0xff] %vm190_vm1, %v186_v19 }
  0xa7   : >> { %v202_v20 = vpop.permute.xlu1 %201  ;;  %v180_v21 = vpop.permute.xlu0 %179 }
  0xa8   : >> { %v207_v22 = vsel %vm205_vm3, %v202_v20, %v172_v5  ;;  %v185_v23 = vsel %vm183_vm2, %v172_v5, %v180_v21  ;;  %161 = sbr.rel (!%p159_p4) target bundleno = 39 (0x27), region = 131 }
  0xa9   : >> { %v209_v24 = vsub.f32 %v166_v1, %v207_v22  ;;  %v187_v25 = vsub.f32 %v166_v1, %v185_v23 }
  0xab   : >> { %721 = vst.msk [vmem:[%s1189_s28 + $0x28] sm:$0xff] %vm190_vm1, %v209_v24 }
  0xac   : >> { %192 = vst.msk [vmem:[%s1189_s28 + $0x8] sm:$0xff] %vm190_vm1, %v187_v25 }
  0xad PF: > { %p228_p6 = scmp.eq.s32.totalorder %s1013_s9, 1 }
  0xaf   : > { %p229_p8 = pnand %p228_p6, %p151_p1 }
  0xb0   : > { %s1219_s29 = smov (!%p229_p8), 0  }
  0xb1   : > { %232 = sbr.rel (%p229_p8) target bundleno = 315 (0x13b), region = 43 }
  0xb6 LB: >> { %s725_s30 = sshll.u32 %s1037_s29, 4  ;;  %vm245_vm4 = vcmask 1046528   ;;  %s1052_s4 = smov 127   ;;  %vm265_vm5 = vcmask 130048   ;;  %vm258_vm6 = vcmask 121856   ;;  %vm275_vm7 = vcmask 7168   ;;  %s1037_s29 = sphi %s1219_s29, %s238_s29  }
  0xb7   : >> { %s240_s3 = scalar_lea.vmem [#allocation2], %s725_s30  ;;  %s726_s5 = sshll.u32 %s1037_s29, 6 }
  0xb8   : >> { %v241_v26 = vld [vmem:[%s240_s3] sm:$0xff]  ;;  %v242_v27 = vld [vmem:[%s240_s3 + $0x8] sm:$0xff]  ;;  %s1053_s14 = smov 1   ;;  %s1227_s18 = scalar_lea.vmem %s1179_s19, %s726_s5 [#allocation5] }
  0xb9   : >> { %252 = vrot.lane.b32.xlu0 %v241_v26, %s1052_s4  ;;  %v246_v28 = vrot.slane %v241_v26, 1  ;;  %v247_v29 = vrot.slane %v242_v27, 1  ;;  %s238_s29 = sadd.s32 1, %s1037_s29  }
  0xba   : >> { %p235_p9 = scmp.ge.s32.totalorder %s238_s29, 8  }
  0xbb   : >> { %v248_v30 = vsel %vm245_vm4, %v246_v28, %v247_v29  ;;  %v251_v31 = vsel %vm245_vm4, %v247_v29, %v242_v27 }
  0xbc   : >> { %269 = vrot.lane.b32.xlu1 %v248_v30, %s1053_s14  ;;  %v284_v32 = vsub.f32 %v241_v26, %v248_v30  ;;  %v285_v33 = vsub.f32 %v242_v27, %v251_v31  ;;  %290 = vrot.lane.b32.xlu2 %v248_v30, %s1052_s4 }
  0xbe   : >> { %731 = vst.msk [vmem:[%s1227_s18 + $0x20] sm:$0xff] %vm265_vm5, %v284_v32 }
  0xbf   : >> { %732 = vst.msk [vmem:[%s1227_s18 + $0x28] sm:$0xff] %vm265_vm5, %v285_v33 }
  0xc1   : >> { %254 = vrot.lane.b32.xlu0 %v242_v27, %s1052_s4 }
  0xc4   : >> { %271 = vrot.lane.b32.xlu1 %v251_v31, %s1053_s14  ;;  %292 = vrot.lane.b32.xlu2 %v251_v31, %s1052_s4 }
 0x116   : >> { %v291_v34 = vpop.permute.xlu2 %290 }
 0x117   : >> { %v296_v35 = vsel %vm258_vm6, %v291_v34, %v248_v30 }
 0x118   : >> { %v298_v36 = vsub.f32 %v241_v26, %v296_v35 }
 0x11a   : >> { %734 = vst.msk [vmem:[%s1227_s18 + $0x30] sm:$0xff] %vm265_vm5, %v298_v36 }
 0x11e   : >> { %v293_v37 = vpop.permute.xlu2 %292 }
 0x11f   : >> { %v297_v38 = vsel %vm258_vm6, %v293_v37, %v251_v31 }
 0x120   : >> { %v299_v39 = vsub.f32 %v242_v27, %v297_v38 }
 0x122   : >> { %735 = vst.msk [vmem:[%s1227_s18 + $0x38] sm:$0xff] %vm265_vm5, %v299_v39 }
 0x12b   : >> { %v253_v40 = vpop.permute.xlu0 %252 }
 0x12c   : >> { %v259_v41 = vsel %vm258_vm6, %v253_v40, %v241_v26 }
 0x12d   : >> { %v261_v42 = vsub.f32 %v241_v26, %v259_v41 }
 0x12e   : >> { %v270_v43 = vpop.permute.xlu1 %269 }
 0x12f   : >> { %266 = vst.msk [vmem:[%s1227_s18] sm:$0xff] %vm265_vm5, %v261_v42  ;;  %v276_v44 = vsel %vm275_vm7, %v248_v30, %v270_v43 }
 0x130   : >> { %v278_v45 = vsub.f32 %v241_v26, %v276_v44 }
 0x132   : >> { %728 = vst.msk [vmem:[%s1227_s18 + $0x10] sm:$0xff] %vm265_vm5, %v278_v45 }
 0x133   : >> { %v255_v46 = vpop.permute.xlu0 %254 }
 0x134   : >> { %v260_v47 = vsel %vm258_vm6, %v255_v46, %v242_v27 }
 0x135   : >> { %v262_v48 = vsub.f32 %v242_v27, %v260_v47 }
 0x136   : >> { %v272_v49 = vpop.permute.xlu1 %271  ;;  %237 = sbr.rel (!%p235_p9) target bundleno = 182 (0xb6), region = 142 }
 0x137   : >> { %267 = vst.msk [vmem:[%s1227_s18 + $0x8] sm:$0xff] %vm265_vm5, %v262_v48  ;;  %v277_v50 = vsel %vm275_vm7, %v251_v31, %v272_v49 }
 0x138   : >> { %v279_v51 = vsub.f32 %v242_v27, %v277_v50 }
 0x13a   : >> { %729 = vst.msk [vmem:[%s1227_s18 + $0x18] sm:$0xff] %vm265_vm5, %v279_v51 }
 0x13b PF: > { %p304_p10 = scmp.eq.s32.totalorder %s1017_s10, 1 }
 0x13d   : > { %p305_p11 = pnand %p304_p10, %p152_p2 }
 0x13e   : > { %s1257_s20 = smov (!%p305_p11), 0  }
 0x13f   : > { %308 = sbr.rel (%p305_p11) target bundleno = 474 (0x1da), region = 54 }
 0x144 LB: >> { %v1054_v52 = vmov 0   ;;  %v1055_v53 = vmov 15   ;;  %s736_s23 = sshll.u32 %s1041_s20, 4  ;;  %vm322_vm8 = vcmask 1041408   ;;  %s737_s25 = sshll.u32 %s1041_s20, 6  ;;  %vm351_vm9 = vcmask 130048   ;;  %s1041_s20 = sphi %s1257_s20, %s314_s20  }
 0x145   : >> { %907 = vset.pattern.permute.xlu0 %v1054_v52  ;;  %908 = vset.pattern.permute.xlu2 %v1055_v53  ;;  %s316_s24 = scalar_lea.vmem [#allocation2], %s736_s23  ;;  %s1056_s26 = smov 2   ;;  %vm344_vm10 = vcmask 15360   ;;  %vm374_vm11 = vcmask 113664  }
 0x146   : >> { %v317_v54 = vld [vmem:[%s316_s24] sm:$0xff]  ;;  %v318_v55 = vld [vmem:[%s316_s24 + $0x8] sm:$0xff]  ;;  %s1265_s27 = scalar_lea.vmem %s1179_s19, %s737_s25 [#allocation5]  ;;  %s1057_s28 = smov 126  }
 0x147   : >> { %v319_v56 = vperm.slane %v317_v54, 0  ;;  %v323_v57 = vrot.slane %v317_v54, 6  ;;  %v324_v58 = vrot.slane %v318_v55, 6  ;;  %s314_s20 = sadd.s32 1, %s1041_s20  }
 0x148   : >> { %p311_p12 = scmp.ge.s32.totalorder %s314_s20, 8  }
 0x149   : >> { %v328_v59 = vsel %vm322_vm8, %v319_v56, %v323_v57  ;;  %v325_v60 = vsel %vm322_vm8, %v323_v57, %v324_v58 }
 0x14a   : >> { %338 = vrot.lane.b32.xlu1 %v328_v59, %s1056_s26  ;;  %v354_v61 = vsub.f32 %v317_v54, %v328_v59  ;;  %331 = vperm.xlu0 %907, %v328_v59   ;;  %v355_v62 = vsub.f32 %v318_v55, %v325_v60 }
 0x14b   : >> { %361 = vperm.xlu2 %908, %v328_v59  }
 0x14c   : >> { %739 = vst.msk [vmem:[%s1265_s27 + $0x10] sm:$0xff] %vm351_vm9, %v354_v61 }
 0x14d   : >> { %740 = vst.msk [vmem:[%s1265_s27 + $0x18] sm:$0xff] %vm351_vm9, %v355_v62 }
 0x152   : >> { %340 = vrot.lane.b32.xlu1 %v325_v60, %s1056_s26  ;;  %335 = vperm.xlu0 %907, %v325_v60  }
 0x153   : >> { %365 = vperm.xlu2 %908, %v325_v60  }
 0x15a   : >> { %370 = vrot.lane.b32.xlu1 %v325_v60, %s1057_s28  ;;  %368 = vrot.lane.b32.xlu0 %v328_v59, %s1057_s28 }
 0x15b   : >> { %909 = vset.pattern.permute.xlu2 %v1054_v52 }
 0x15c   : >> { %384 = vperm.xlu2 %909, %v317_v54  }
 0x162   : >> { %391 = vrot.lane.b32.xlu1 %v317_v54, %s1056_s26  ;;  %388 = vperm.xlu0 %907, %v318_v55  }
 0x164   : >> { %393 = vrot.lane.b32.xlu2 %v318_v55, %s1056_s26 }
 0x1a5   : >> { %v362_v63 = vpop.permute.xlu2 %361 }
 0x1ad   : >> { %v366_v4 = vpop.permute.xlu2 %365 }
 0x1b6   : >> { %v385_v9 = vpop.permute.xlu2 %384 }
 0x1bc   : >> { %v339_v0 = vpop.permute.xlu1 %338  ;;  %v332_v1 = vpop.permute.xlu0 %331 }
 0x1bd   : >> { %v345_v2 = vsel %vm344_vm10, %v332_v1, %v339_v0 }
 0x1be   : >> { %v347_v3 = vsub.f32 %v317_v54, %v345_v2  ;;  %v394_v16 = vpop.permute.xlu2 %393 }
 0x1c0   : >> { %352 = vst.msk [vmem:[%s1265_s27] sm:$0xff] %vm351_vm9, %v347_v3 }
 0x1c4   : >> { %v341_v5 = vpop.permute.xlu1 %340  ;;  %v336_v6 = vpop.permute.xlu0 %335 }
 0x1c5   : >> { %v346_v7 = vsel %vm344_vm10, %v336_v6, %v341_v5 }
 0x1c6   : >> { %v348_v8 = vsub.f32 %v318_v55, %v346_v7 }
 0x1c8   : >> { %353 = vst.msk [vmem:[%s1265_s27 + $0x8] sm:$0xff] %vm351_vm9, %v348_v8 }
 0x1cc   : >> { %v371_v10 = vpop.permute.xlu1 %370  ;;  %v369_v11 = vpop.permute.xlu0 %368 }
 0x1cd   : >> { %v376_v12 = vsel %vm374_vm11, %v371_v10, %v366_v4  ;;  %v375_v13 = vsel %vm374_vm11, %v369_v11, %v362_v63 }
 0x1ce   : >> { %v378_v14 = vsub.f32 %v318_v55, %v376_v12  ;;  %v377_v15 = vsub.f32 %v317_v54, %v375_v13 }
 0x1d0   : >> { %743 = vst.msk [vmem:[%s1265_s27 + $0x28] sm:$0xff] %vm351_vm9, %v378_v14 }
 0x1d1   : >> { %742 = vst.msk [vmem:[%s1265_s27 + $0x20] sm:$0xff] %vm351_vm9, %v377_v15 }
 0x1d4   : >> { %v392_v17 = vpop.permute.xlu1 %391  ;;  %v389_v18 = vpop.permute.xlu0 %388 }
 0x1d5   : >> { %v397_v19 = vsel %vm344_vm10, %v385_v9, %v392_v17  ;;  %v398_v20 = vsel %vm344_vm10, %v389_v18, %v394_v16  ;;  %313 = sbr.rel (!%p311_p12) target bundleno = 324 (0x144), region = 153 }
 0x1d6   : >> { %v399_v21 = vsub.f32 %v317_v54, %v397_v19  ;;  %v400_v22 = vsub.f32 %v318_v55, %v398_v20 }
 0x1d8   : >> { %745 = vst.msk [vmem:[%s1265_s27 + $0x30] sm:$0xff] %vm351_vm9, %v399_v21 }
 0x1d9   : >> { %746 = vst.msk [vmem:[%s1265_s27 + $0x38] sm:$0xff] %vm351_vm9, %v400_v22 }
 0x1da PF: > { %p405_p13 = pnand %p304_p10, %p228_p6 }
 0x1db   : > { %s1294_s29 = smov (!%p405_p13), 0  }
 0x1dc   : > { %408 = sbr.rel (%p405_p13) target bundleno = 628 (0x274), region = 65 }
 0x1e1 LB: >> { %v1058_v23 = vmov 15   ;;  %v1059_v24 = vmov 0   ;;  %s747_s30 = sshll.u32 %s1045_s29, 4  ;;  %vm422_vm12 = vcmask 1045504   ;;  %s1060_s4 = smov 126   ;;  %vm450_vm13 = vcmask 130048   ;;  %s1045_s29 = sphi %s1294_s29, %s414_s29  }
 0x1e2   : >> { %910 = vset.pattern.permute.xlu0 %v1058_v23  ;;  %911 = vset.pattern.permute.xlu2 %v1059_v24  ;;  %s416_s3 = scalar_lea.vmem [#allocation2], %s747_s30  ;;  %s748_s5 = sshll.u32 %s1045_s29, 6  ;;  %vm443_vm14 = vcmask 113664   ;;  %vm468_vm15 = vcmask 15360  }
 0x1e3   : >> { %v417_v25 = vld [vmem:[%s416_s3] sm:$0xff]  ;;  %v418_v26 = vld [vmem:[%s416_s3 + $0x8] sm:$0xff]  ;;  %s1302_s14 = scalar_lea.vmem %s1179_s19, %s748_s5 [#allocation5]  ;;  %s1061_s18 = smov 2  }
 0x1e4   : >> { %437 = vrot.lane.b32.xlu1 %v417_v25, %s1060_s4  ;;  %430 = vperm.xlu0 %910, %v417_v25   ;;  %v423_v27 = vrot.slane %v417_v25, 2  ;;  %v424_v28 = vrot.slane %v418_v26, 2  ;;  %v419_v29 = vperm.slane %v418_v26, 7  ;;  %s414_s29 = sadd.s32 1, %s1045_s29  }
 0x1e5   : >> { %p411_p0 = scmp.ge.s32.totalorder %s414_s29, 8  }
 0x1e6   : >> { %v425_v30 = vsel %vm422_vm12, %v423_v27, %v424_v28  ;;  %v428_v31 = vsel %vm422_vm12, %v424_v28, %v419_v29 }
 0x1e7   : >> { %454 = vperm.xlu2 %911, %v425_v30   ;;  %v477_v32 = vsub.f32 %v417_v25, %v425_v30  ;;  %v478_v33 = vsub.f32 %v418_v26, %v428_v31 }
 0x1e9   : >> { %753 = vst.msk [vmem:[%s1302_s14 + $0x20] sm:$0xff] %vm450_vm13, %v477_v32 }
 0x1ea   : >> { %754 = vst.msk [vmem:[%s1302_s14 + $0x28] sm:$0xff] %vm450_vm13, %v478_v33 }
 0x1ec   : >> { %439 = vrot.lane.b32.xlu1 %v418_v26, %s1060_s4  ;;  %434 = vperm.xlu0 %910, %v418_v26  }
 0x1ef   : >> { %459 = vperm.xlu2 %911, %v428_v31  }
 0x1f4   : >> { %464 = vrot.lane.b32.xlu1 %v428_v31, %s1061_s18  ;;  %462 = vrot.lane.b32.xlu0 %v425_v30, %s1061_s18 }
 0x1f7   : >> { %912 = vset.pattern.permute.xlu2 %v1058_v23 }
 0x1f8   : >> { %484 = vperm.xlu2 %912, %v425_v30  }
 0x1fc   : >> { %491 = vrot.lane.b32.xlu1 %v425_v30, %s1060_s4  ;;  %488 = vperm.xlu0 %910, %v428_v31  }
 0x200   : >> { %493 = vrot.lane.b32.xlu2 %v428_v31, %s1060_s4 }
 0x241   : >> { %v455_v34 = vpop.permute.xlu2 %454 }
 0x249   : >> { %v460_v39 = vpop.permute.xlu2 %459 }
 0x252   : >> { %v485_v44 = vpop.permute.xlu2 %484 }
 0x256   : >> { %v438_v35 = vpop.permute.xlu1 %437  ;;  %v431_v36 = vpop.permute.xlu0 %430 }
 0x257   : >> { %v444_v37 = vsel %vm443_vm14, %v438_v35, %v431_v36 }
 0x258   : >> { %v446_v38 = vsub.f32 %v417_v25, %v444_v37 }
 0x25a   : >> { %451 = vst.msk [vmem:[%s1302_s14] sm:$0xff] %vm450_vm13, %v446_v38  ;;  %v494_v51 = vpop.permute.xlu2 %493 }
 0x25e   : >> { %v440_v40 = vpop.permute.xlu1 %439  ;;  %v435_v41 = vpop.permute.xlu0 %434 }
 0x25f   : >> { %v445_v42 = vsel %vm443_vm14, %v440_v40, %v435_v41 }
 0x260   : >> { %v447_v43 = vsub.f32 %v418_v26, %v445_v42 }
 0x262   : >> { %452 = vst.msk [vmem:[%s1302_s14 + $0x8] sm:$0xff] %vm450_vm13, %v447_v43 }
 0x266   : >> { %v465_v45 = vpop.permute.xlu1 %464  ;;  %v463_v46 = vpop.permute.xlu0 %462 }
 0x267   : >> { %v470_v47 = vsel %vm468_vm15, %v460_v39, %v465_v45  ;;  %v469_v48 = vsel %vm468_vm15, %v455_v34, %v463_v46 }
 0x268   : >> { %v472_v49 = vsub.f32 %v418_v26, %v470_v47  ;;  %v471_v50 = vsub.f32 %v417_v25, %v469_v48 }
 0x26a   : >> { %751 = vst.msk [vmem:[%s1302_s14 + $0x18] sm:$0xff] %vm450_vm13, %v472_v49 }
 0x26b   : >> { %750 = vst.msk [vmem:[%s1302_s14 + $0x10] sm:$0xff] %vm450_vm13, %v471_v50 }
 0x26e   : >> { %v492_v52 = vpop.permute.xlu1 %491  ;;  %v489_v53 = vpop.permute.xlu0 %488 }
 0x26f   : >> { %v497_v54 = vsel %vm443_vm14, %v492_v52, %v485_v44  ;;  %v498_v55 = vsel %vm443_vm14, %v494_v51, %v489_v53  ;;  %413 = sbr.rel (!%p411_p0) target bundleno = 481 (0x1e1), region = 164 }
 0x270   : >> { %v499_v56 = vsub.f32 %v417_v25, %v497_v54  ;;  %v500_v57 = vsub.f32 %v418_v26, %v498_v55 }
 0x272   : >> { %756 = vst.msk [vmem:[%s1302_s14 + $0x30] sm:$0xff] %vm450_vm13, %v499_v56 }
 0x273   : >> { %757 = vst.msk [vmem:[%s1302_s14 + $0x38] sm:$0xff] %vm450_vm13, %v500_v57 }
 0x274 PF: > { %s506_s20 = scalar_lea.sflag [#allocation4], %s143_s15 }
 0x275   : > { %s759_s23 = sshll.u32 %s1017_s10, 1  ;;  %s534_s24 = sshll.u32 %s1179_s19, 4  ;;  %s535_s24 = int_to_ptr.vmem [resolvable:$true] %s534_s24 }
 0x276   : > { %s514_s25 = sadd.s32 %s1013_s9, %s759_s23  ;;  %s1062_s15 = smov 1024  }
 0x277   : > { %s766_s26 = sshll.u32 %s514_s25, 6  ;;  %771 = sst [smem:[#allocation7]] (%p1132_p5), %s1062_s15 }
 0x278   : > { %s523_s29 = scalar_lea.hbm %s1378_s1, %s766_s26  ;;  %s1063_s3 = smov 4096  }
 0x279   : > { %s536_s30 = sshll.u32 %s523_s29, 4  ;;  %772 = sst [smem:[#allocation7 + $0x1]] (%p1132_p5), %s1063_s3  ;;  %s537_s30 = int_to_ptr.hbm [resolvable:$true] %s536_s30 }
 0x27a   : > { %s1064_s10 = smov 8   ;;  %s1065_s19 = smov 128  }
 0x27b   : > { %773 = sst [smem:[#allocation7 + $0x2]] (%p1132_p5), %s1064_s10  ;;  %s1066_s9 = smov [#allocation6]  }
 0x27c   : > { %774 = sst [smem:[#allocation7 + $0x3]] (%p1132_p5), %s1065_s19  ;;  %s1067_s4 = smov 0  }
 0x27d   : > { %775 = sst [smem:[#allocation7 + $0x4]] (%p1132_p5), %s1065_s19 }
 0x27e   : > { %776 = sst [smem:[#allocation7 + $0x5]] (%p1132_p5), %s1064_s10 }
 0x27f   : > { %777 = dma.general (%p1132_p5), %s535_s24, 8192, %s537_s30, %s506_s20, %s1066_s9, [#allocation7], %s1067_s4, 0  }
 0x280 PF: > { %p789_p1 = scmp.ge.s32.totalorder %s1029_s13, 2  ;;  %s564_s5 = sand.u32 1, %s1001_s6  }
 0x281   : > { %s565_s14 = scalar_lea.sflag [#allocation4], %s564_s5 }
 0x282   : > { %p784_p2 = pnand %p789_p1, %p1138_p7 }
 0x284   : > { %p785_p3 = pneg %p784_p2 }
 0x286   : > { %996 = dma.done.wait (%p785_p3), %s565_s14, 8192  }
 0x287   : > { %998 = vsyncadd (%p785_p3), %s565_s14, 4294959104  ;;  %s15_s13 = sadd.s32 1, %s1029_s13   ;;  %s1383_s6 = smov %s1005_s7 }
 0x288   : > { %p12_p4 = scmp.ge.s32.totalorder %s15_s13, 6   ;;  %s1384_s7 = smov %s1009_s8 }
 0x289   : > { %s1385_s8 = smov %s1160_s2  ;;  %s1386_s9 = smov %s1021_s11 }
 0x28a   : > { %s1387_s10 = smov %s1025_s12  ;;  %s1388_s11 = smov %s1391_s16 }
 0x28b   : > { %s1389_s12 = smov %s1395_s17  ;;  %14 = sbr.rel (!%p12_p4) target bundleno = 6 (0x6), region = 175 }
 0x290   :  { %571 = vsyncpa [#allocation3], 1 }
 0x291   :  { %573 = vsyncpa [#allocation3 + $0x1], 1 }
 0x292   :  { %574 = vsyncpa [#allocation4], 1 }
 0x293   :  { %576 = vsyncpa [#allocation4 + $0x1], 1 }

</bundles_post_ra>
